<compile_context>
chip_gen: v5e
topology: v5e:2x2
jax: 0.10.0
libtpu: 0.0.40
codegen_flags: <defaults>
</compile_context>

<pallas_src>
import functools
import math

import jax
import jax.numpy as jnp
from jax.experimental import pallas as pl
from jax.experimental.pallas import tpu as pltpu

_LANE = 128


def _round_up(n, mult):
    return ((n + mult - 1) // mult) * mult


# ----------------------------------------------------------------------------
# Kernel
# ----------------------------------------------------------------------------
def _fused_mlp_kernel(*refs, num_layers, use_bf16):
    """refs = (x_ref, w0, b0, w1, b1, ..., w_{L-1}, b_{L-1}, o_ref)."""
    x_ref = refs[0]
    o_ref = refs[-1]
    h = x_ref[...]                                   # (tm, K_pad), stays on-chip
    for l in range(num_layers):
        w_ref = refs[1 + 2 * l]
        b_ref = refs[2 + 2 * l]
        w = w_ref[...]
        if use_bf16:
            # bf16 operands feed the MXU at native rate; accumulation stays f32.
            lhs = h.astype(jnp.bfloat16)
            rhs = w.astype(jnp.bfloat16)
        else:
            lhs, rhs = h, w
        h = jnp.dot(lhs, rhs, preferred_element_type=jnp.float32)
        h = h + b_ref[...]                           # (tm, N_pad) + (1, N_pad), VPU
        if l < num_layers - 1:
            h = jnp.maximum(h, 0.0)                  # ReLU (module's `activation`)
    o_ref[...] = h.astype(o_ref.dtype)


# ----------------------------------------------------------------------------
# pallas_call wrapper
# ----------------------------------------------------------------------------
def fused_mlp(x_pad, padded_params, *, tm, use_bf16=True, single_buffer_weights=True):
    """x_pad: (M_pad, K_pad); padded_params: [(w (Kin_pad, Kout_pad), b (1, Kout_pad))]."""
    M, K = x_pad.shape
    num_layers = len(padded_params)
    n_out = padded_params[-1][0].shape[1]
    assert M % tm == 0

    def weight_spec(shape):
        if single_buffer_weights:
            # Constant (0, 0) block: single-buffer it, the block never changes.
            return pl.BlockSpec(shape, lambda i: (0, 0), pipeline_mode=pl.Buffered(1))
        return pl.BlockSpec(shape, lambda i: (0, 0))

    in_specs = [pl.BlockSpec((tm, K), lambda i: (i, 0))]     # row tile of activations
    operands = [x_pad]
    param_bytes = 0
    for w, b in padded_params:
        kin, kout = w.shape
        in_specs.append(weight_spec((kin, kout)))
        in_specs.append(weight_spec((1, kout)))
        operands += [w, b]
        param_bytes += (kin * kout + kout) * 4

    weight_buf = 1 if single_buffer_weights else 2
    # TODO(synk): for very wide layers (resident padded weights > ~24 MiB) switch
    # to a K-reduction grid axis ("arbitrary") with an f32 VMEM accumulator
    # instead of keeping full weights resident — needed to fit v7x's 64 MiB VMEM
    # at ~2k-4k hidden widths.
    assert weight_buf * param_bytes <= (24 << 20), (
        "layer too wide for the resident-weight scheme; add K-tiling")

    grid = (M // tm,)
    # Row tiles are independent; let v7x's 2 TensorCores split any grid >= 2.
    sem = ("parallel",) if grid[0] >= 2 else ("arbitrary",)

    # Right-sized VMEM budget: double-buffered x and out, (single|double)-buffered
    # weights/biases, +25% margin, 4 MiB floor, 48 MiB cap (v7x headroom).
    vmem_bytes = (2 * tm * K * 4
                  + weight_buf * param_bytes
                  + 2 * tm * n_out * 4)
    vmem_bytes = int(vmem_bytes * 1.25) + (1 << 20)
    vmem_bytes = min(max(vmem_bytes, 4 << 20), 48 << 20)

    return pl.pallas_call(
        functools.partial(_fused_mlp_kernel, num_layers=num_layers, use_bf16=use_bf16),
        out_shape=jax.ShapeDtypeStruct((M, n_out), x_pad.dtype),
        grid_spec=pltpu.PrefetchScalarGridSpec(
            num_scalar_prefetch=0,
            grid=grid,
            in_specs=in_specs,
            out_specs=pl.BlockSpec((tm, n_out), lambda i: (i, 0)),
        ),
        compiler_params=pltpu.CompilerParams(
            dimension_semantics=sem,
            vmem_limit_bytes=vmem_bytes,
        ),
    )(*operands)


# ----------------------------------------------------------------------------
# Parameters: init + one-time padding (hoisted out of the forward hot path)
# ----------------------------------------------------------------------------
def init_fc_params(key, num_hidden_nodes, num_inputs, outputs):
    """Mirror FC.__init__: dims = [num_inputs, *num_hidden_nodes, outputs].

    Weights stored as (in_features, out_features) (transposed vs. PyTorch) so the
    kernel computes y = x @ W + b directly on the MXU.  Returns both the raw
    params (for the reference) and the lane-padded params used by the kernel;
    padding happens ONCE here, never per forward call.
    """
    dims = [num_inputs] + list(num_hidden_nodes) + [outputs]
    params, padded_params = [], []
    for i in range(len(dims) - 1):
        fan_in, fan_out = dims[i], dims[i + 1]
        key, kw, kb = jax.random.split(key, 3)
        bound = 1.0 / math.sqrt(fan_in)
        w = jax.random.uniform(kw, (fan_in, fan_out), jnp.float32, -bound, bound)
        b = jax.random.uniform(kb, (1, fan_out), jnp.float32, -bound, bound)
        params.append((w, b))

        kin_p, kout_p = _round_up(fan_in, _LANE), _round_up(fan_out, _LANE)
        wp = jnp.zeros((kin_p, kout_p), jnp.float32).at[:fan_in, :fan_out].set(w)
        bp = jnp.zeros((1, kout_p), jnp.float32).at[:, :fan_out].set(b)
        padded_params.append((wp, bp))
    return params, padded_params


# ----------------------------------------------------------------------------
# Forward (matches FC.forward)
# ----------------------------------------------------------------------------
def fc_forward(x, padded_params, num_inputs, out_dim, *, tm=512, use_bf16=True):
    """Fused forward: x.view(-1, num_inputs) -> (L-1) x (Linear+ReLU) -> Linear."""
    x2 = x.reshape(-1, num_inputs).astype(jnp.float32)       # x.view(-1, num_inputs)
    M, K = x2.shape
    K_pad = padded_params[0][0].shape[0]
    assert K <= K_pad

    # Row tile: big multiples of 256 for large batches (keeps the 2x256 MXUs on
    # v6e/v7x fed per weight load); a single full-block tile for small batches.
    if M >= tm:
        tm_eff = tm
    elif M >= 256:
        tm_eff = 256
    else:
        tm_eff = _round_up(max(M, 8), 8)
    M_pad = _round_up(M, tm_eff)

    # Only x is padded per call (zero rows / zero feature columns keep the math
    # exact; padded rows are sliced off below, no cross-row op ever sees them).
    x_pad = jnp.zeros((M_pad, K_pad), x2.dtype).at[:M, :K].set(x2)

    try:
        out_pad = fused_mlp(x_pad, padded_params, tm=tm_eff, use_bf16=use_bf16,
                            single_buffer_weights=True)
    except Exception:
        # Fallback for JAX builds without BlockSpec(pipeline_mode=pl.Buffered(1))
        # support on the top-level pallas_call pipeline; semantics identical.
        out_pad = fused_mlp(x_pad, padded_params, tm=tm_eff, use_bf16=use_bf16,
                            single_buffer_weights=False)
    return out_pad[:M, :out_dim]


def fc_reference(x, params, num_inputs):
    x = x.reshape(-1, num_inputs)
    for w, b in params[:-1]:
        x = jnp.maximum(x @ w + b, 0.0)
    w, b = params[-1]
    return x @ w + b


if __name__ == "__main__":
    key = jax.random.PRNGKey(0)
    kx, kp = jax.random.split(key)

    num_inputs = 64
    hidden = [32, 32]
    outputs = 8

    # input shaped like an un-flattened batch: (16, 4, 16) -> view(-1, 64) -> (16, 64)
    x = jax.random.normal(kx, (16, 4, 16), dtype=jnp.float32)
    params, padded_params = init_fc_params(kp, hidden, num_inputs, outputs)

    ref = fc_reference(x, params, num_inputs)

    # Default path: bf16 MXU operands, f32 accumulation (relaxed tolerance).
    out = fc_forward(x, padded_params, num_inputs, outputs)
    out = jax.block_until_ready(out)
    assert out.shape == (16, outputs)
    assert jnp.allclose(out, ref, atol=2e-2, rtol=2e-2)

    # Exact f32 path: bit-for-bit math vs. the reference within 1e-5.
    out_f32 = fc_forward(x, padded_params, num_inputs, outputs, use_bf16=False)
    out_f32 = jax.block_until_ready(out_f32)
    assert jnp.allclose(out_f32, ref, atol=1e-5, rtol=1e-5)

    print("KERNEL_OK")
</pallas_src>

<mosaic_0001>
module attributes {stable_mosaic.version = 11 : i64} {
  func.func @_fused_mlp_kernel(%arg0: i32, %arg1: memref<16x128xf32, #tpu.memory_space<vmem>>, %arg2: memref<128x128xf32, #tpu.memory_space<vmem>>, %arg3: memref<1x128xf32, #tpu.memory_space<vmem>>, %arg4: memref<128x128xf32, #tpu.memory_space<vmem>>, %arg5: memref<1x128xf32, #tpu.memory_space<vmem>>, %arg6: memref<128x128xf32, #tpu.memory_space<vmem>>, %arg7: memref<1x128xf32, #tpu.memory_space<vmem>>, %arg8: memref<16x128xf32, #tpu.memory_space<vmem>>) attributes {dimension_semantics = [#tpu.dimension_semantics<arbitrary>], iteration_bounds = array<i64: 1>, scalar_prefetch = 0 : i64, scratch_operands = 0 : i64, tpu.core_type = #tpu.core_type<tc>, window_params = [{transform_indices = @transform_0, window_bounds = array<i64: 16, 128>}, {pipeline_mode = #tpu.pipeline_mode<synchronous>, transform_indices = @transform_1, window_bounds = array<i64: 128, 128>}, {pipeline_mode = #tpu.pipeline_mode<synchronous>, transform_indices = @transform_2, window_bounds = array<i64: 1, 128>}, {pipeline_mode = #tpu.pipeline_mode<synchronous>, transform_indices = @transform_3, window_bounds = array<i64: 128, 128>}, {pipeline_mode = #tpu.pipeline_mode<synchronous>, transform_indices = @transform_4, window_bounds = array<i64: 1, 128>}, {pipeline_mode = #tpu.pipeline_mode<synchronous>, transform_indices = @transform_5, window_bounds = array<i64: 128, 128>}, {pipeline_mode = #tpu.pipeline_mode<synchronous>, transform_indices = @transform_6, window_bounds = array<i64: 1, 128>}, {transform_indices = @transform_7, window_bounds = array<i64: 16, 128>}]} {
    %c0 = arith.constant 0 : index
    %c0_0 = arith.constant 0 : index
    %0 = vector.load %arg1[%c0, %c0_0] : memref<16x128xf32, #tpu.memory_space<vmem>>, vector<16x128xf32>
    %c0_1 = arith.constant 0 : index
    %c0_2 = arith.constant 0 : index
    %1 = vector.load %arg2[%c0_1, %c0_2] : memref<128x128xf32, #tpu.memory_space<vmem>>, vector<128x128xf32>
    %2 = arith.truncf %0 : vector<16x128xf32> to vector<16x128xbf16>
    %3 = arith.truncf %1 : vector<128x128xf32> to vector<128x128xbf16>
    %cst = arith.constant dense<0.000000e+00> : vector<16x128xf32>
    %4 = tpu.matmul %2, %3, %cst {dimension_numbers = #tpu.dot_dimension_numbers<[1], [0], [0], [1], [0, 0, 1, 1], [], []>} : vector<16x128xbf16>, vector<128x128xbf16>, vector<16x128xf32> -> vector<16x128xf32>
    %c0_3 = arith.constant 0 : index
    %c0_4 = arith.constant 0 : index
    %5 = vector.load %arg3[%c0_3, %c0_4] : memref<1x128xf32, #tpu.memory_space<vmem>>, vector<1x128xf32>
    %6 = vector.broadcast %5 : vector<1x128xf32> to vector<16x128xf32>
    %7 = arith.addf %4, %6 : vector<16x128xf32>
    %cst_5 = arith.constant 0.000000e+00 : f32
    %8 = vector.broadcast %cst_5 : f32 to vector<16x128xf32>
    %9 = arith.maximumf %7, %8 : vector<16x128xf32>
    %c0_6 = arith.constant 0 : index
    %c0_7 = arith.constant 0 : index
    %10 = vector.load %arg4[%c0_6, %c0_7] : memref<128x128xf32, #tpu.memory_space<vmem>>, vector<128x128xf32>
    %11 = arith.truncf %9 : vector<16x128xf32> to vector<16x128xbf16>
    %12 = arith.truncf %10 : vector<128x128xf32> to vector<128x128xbf16>
    %cst_8 = arith.constant dense<0.000000e+00> : vector<16x128xf32>
    %13 = tpu.matmul %11, %12, %cst_8 {dimension_numbers = #tpu.dot_dimension_numbers<[1], [0], [0], [1], [0, 0, 1, 1], [], []>} : vector<16x128xbf16>, vector<128x128xbf16>, vector<16x128xf32> -> vector<16x128xf32>
    %c0_9 = arith.constant 0 : index
    %c0_10 = arith.constant 0 : index
    %14 = vector.load %arg5[%c0_9, %c0_10] : memref<1x128xf32, #tpu.memory_space<vmem>>, vector<1x128xf32>
    %15 = vector.broadcast %14 : vector<1x128xf32> to vector<16x128xf32>
    %16 = arith.addf %13, %15 : vector<16x128xf32>
    %cst_11 = arith.constant 0.000000e+00 : f32
    %17 = vector.broadcast %cst_11 : f32 to vector<16x128xf32>
    %18 = arith.maximumf %16, %17 : vector<16x128xf32>
    %c0_12 = arith.constant 0 : index
    %c0_13 = arith.constant 0 : index
    %19 = vector.load %arg6[%c0_12, %c0_13] : memref<128x128xf32, #tpu.memory_space<vmem>>, vector<128x128xf32>
    %20 = arith.truncf %18 : vector<16x128xf32> to vector<16x128xbf16>
    %21 = arith.truncf %19 : vector<128x128xf32> to vector<128x128xbf16>
    %cst_14 = arith.constant dense<0.000000e+00> : vector<16x128xf32>
    %22 = tpu.matmul %20, %21, %cst_14 {dimension_numbers = #tpu.dot_dimension_numbers<[1], [0], [0], [1], [0, 0, 1, 1], [], []>} : vector<16x128xbf16>, vector<128x128xbf16>, vector<16x128xf32> -> vector<16x128xf32>
    %c0_15 = arith.constant 0 : index
    %c0_16 = arith.constant 0 : index
    %23 = vector.load %arg7[%c0_15, %c0_16] : memref<1x128xf32, #tpu.memory_space<vmem>>, vector<1x128xf32>
    %24 = vector.broadcast %23 : vector<1x128xf32> to vector<16x128xf32>
    %25 = arith.addf %22, %24 : vector<16x128xf32>
    %c0_17 = arith.constant 0 : index
    %c0_18 = arith.constant 0 : index
    %26 = vector.load %arg8[%c0_17, %c0_18] : memref<16x128xf32, #tpu.memory_space<vmem>>, vector<16x128xf32>
    tpu.vector_store %arg8[%c0_17, %c0_18], %25 {strides = array<i32>} : memref<16x128xf32, #tpu.memory_space<vmem>>, vector<16x128xf32>,
    return
  }
  func.func @transform_0(%arg0: i32) -> (i32, i32) {
    %c0_i32 = arith.constant 0 : i32
    %c0_i32_0 = arith.constant 0 : i32
    return %arg0, %c0_i32 : i32, i32
  }
  func.func @transform_1(%arg0: i32) -> (i32, i32) {
    %c0_i32 = arith.constant 0 : i32
    %c0_i32_0 = arith.constant 0 : i32
    %c0_i32_1 = arith.constant 0 : i32
    return %c0_i32, %c0_i32_0 : i32, i32
  }
  func.func @transform_2(%arg0: i32) -> (i32, i32) {
    %c0_i32 = arith.constant 0 : i32
    %c0_i32_0 = arith.constant 0 : i32
    %c0_i32_1 = arith.constant 0 : i32
    return %c0_i32, %c0_i32_0 : i32, i32
  }
  func.func @transform_3(%arg0: i32) -> (i32, i32) {
    %c0_i32 = arith.constant 0 : i32
    %c0_i32_0 = arith.constant 0 : i32
    %c0_i32_1 = arith.constant 0 : i32
    return %c0_i32, %c0_i32_0 : i32, i32
  }
  func.func @transform_4(%arg0: i32) -> (i32, i32) {
    %c0_i32 = arith.constant 0 : i32
    %c0_i32_0 = arith.constant 0 : i32
    %c0_i32_1 = arith.constant 0 : i32
    return %c0_i32, %c0_i32_0 : i32, i32
  }
  func.func @transform_5(%arg0: i32) -> (i32, i32) {
    %c0_i32 = arith.constant 0 : i32
    %c0_i32_0 = arith.constant 0 : i32
    %c0_i32_1 = arith.constant 0 : i32
    return %c0_i32, %c0_i32_0 : i32, i32
  }
  func.func @transform_6(%arg0: i32) -> (i32, i32) {
    %c0_i32 = arith.constant 0 : i32
    %c0_i32_0 = arith.constant 0 : i32
    %c0_i32_1 = arith.constant 0 : i32
    return %c0_i32, %c0_i32_0 : i32, i32
  }
  func.func @transform_7(%arg0: i32) -> (i32, i32) {
    %c0_i32 = arith.constant 0 : i32
    %c0_i32_0 = arith.constant 0 : i32
    return %arg0, %c0_i32 : i32, i32
  }
}

module attributes {stable_mosaic.version = 11 : i64} {
  func.func @_fused_mlp_kernel(%arg0: i32, %arg1: memref<16x128xf32, #tpu.memory_space<vmem>>, %arg2: memref<128x128xf32, #tpu.memory_space<vmem>>, %arg3: memref<1x128xf32, #tpu.memory_space<vmem>>, %arg4: memref<128x128xf32, #tpu.memory_space<vmem>>, %arg5: memref<1x128xf32, #tpu.memory_space<vmem>>, %arg6: memref<128x128xf32, #tpu.memory_space<vmem>>, %arg7: memref<1x128xf32, #tpu.memory_space<vmem>>, %arg8: memref<16x128xf32, #tpu.memory_space<vmem>>) attributes {dimension_semantics = [#tpu.dimension_semantics<arbitrary>], iteration_bounds = array<i64: 1>, scalar_prefetch = 0 : i64, scratch_operands = 0 : i64, tpu.core_type = #tpu.core_type<tc>, window_params = [{transform_indices = @transform_0, window_bounds = array<i64: 16, 128>}, {pipeline_mode = #tpu.pipeline_mode<synchronous>, transform_indices = @transform_1, window_bounds = array<i64: 128, 128>}, {pipeline_mode = #tpu.pipeline_mode<synchronous>, transform_indices = @transform_2, window_bounds = array<i64: 1, 128>}, {pipeline_mode = #tpu.pipeline_mode<synchronous>, transform_indices = @transform_3, window_bounds = array<i64: 128, 128>}, {pipeline_mode = #tpu.pipeline_mode<synchronous>, transform_indices = @transform_4, window_bounds = array<i64: 1, 128>}, {pipeline_mode = #tpu.pipeline_mode<synchronous>, transform_indices = @transform_5, window_bounds = array<i64: 128, 128>}, {pipeline_mode = #tpu.pipeline_mode<synchronous>, transform_indices = @transform_6, window_bounds = array<i64: 1, 128>}, {transform_indices = @transform_7, window_bounds = array<i64: 16, 128>}]} {
    %c0 = arith.constant 0 : index
    %c0_0 = arith.constant 0 : index
    %0 = vector.load %arg1[%c0, %c0_0] : memref<16x128xf32, #tpu.memory_space<vmem>>, vector<16x128xf32>
    %c0_1 = arith.constant 0 : index
    %c0_2 = arith.constant 0 : index
    %1 = vector.load %arg2[%c0_1, %c0_2] : memref<128x128xf32, #tpu.memory_space<vmem>>, vector<128x128xf32>
    %2 = arith.truncf %0 : vector<16x128xf32> to vector<16x128xbf16>
    %3 = arith.truncf %1 : vector<128x128xf32> to vector<128x128xbf16>
    %cst = arith.constant dense<0.000000e+00> : vector<16x128xf32>
    %4 = tpu.matmul %2, %3, %cst {dimension_numbers = #tpu.dot_dimension_numbers<[1], [0], [0], [1], [0, 0, 1, 1], [], []>} : vector<16x128xbf16>, vector<128x128xbf16>, vector<16x128xf32> -> vector<16x128xf32>
    %c0_3 = arith.constant 0 : index
    %c0_4 = arith.constant 0 : index
    %5 = vector.load %arg3[%c0_3, %c0_4] : memref<1x128xf32, #tpu.memory_space<vmem>>, vector<1x128xf32>
    %6 = vector.broadcast %5 : vector<1x128xf32> to vector<16x128xf32>
    %7 = arith.addf %4, %6 : vector<16x128xf32>
    %cst_5 = arith.constant 0.000000e+00 : f32
    %8 = vector.broadcast %cst_5 : f32 to vector<16x128xf32>
    %9 = arith.maximumf %7, %8 : vector<16x128xf32>
    %c0_6 = arith.constant 0 : index
    %c0_7 = arith.constant 0 : index
    %10 = vector.load %arg4[%c0_6, %c0_7] : memref<128x128xf32, #tpu.memory_space<vmem>>, vector<128x128xf32>
    %11 = arith.truncf %9 : vector<16x128xf32> to vector<16x128xbf16>
    %12 = arith.truncf %10 : vector<128x128xf32> to vector<128x128xbf16>
    %cst_8 = arith.constant dense<0.000000e+00> : vector<16x128xf32>
    %13 = tpu.matmul %11, %12, %cst_8 {dimension_numbers = #tpu.dot_dimension_numbers<[1], [0], [0], [1], [0, 0, 1, 1], [], []>} : vector<16x128xbf16>, vector<128x128xbf16>, vector<16x128xf32> -> vector<16x128xf32>
    %c0_9 = arith.constant 0 : index
    %c0_10 = arith.constant 0 : index
    %14 = vector.load %arg5[%c0_9, %c0_10] : memref<1x128xf32, #tpu.memory_space<vmem>>, vector<1x128xf32>
    %15 = vector.broadcast %14 : vector<1x128xf32> to vector<16x128xf32>
    %16 = arith.addf %13, %15 : vector<16x128xf32>
    %cst_11 = arith.constant 0.000000e+00 : f32
    %17 = vector.broadcast %cst_11 : f32 to vector<16x128xf32>
    %18 = arith.maximumf %16, %17 : vector<16x128xf32>
    %c0_12 = arith.constant 0 : index
    %c0_13 = arith.constant 0 : index
    %19 = vector.load %arg6[%c0_12, %c0_13] : memref<128x128xf32, #tpu.memory_space<vmem>>, vector<128x128xf32>
    %20 = arith.truncf %18 : vector<16x128xf32> to vector<16x128xbf16>
    %21 = arith.truncf %19 : vector<128x128xf32> to vector<128x128xbf16>
    %cst_14 = arith.constant dense<0.000000e+00> : vector<16x128xf32>
    %22 = tpu.matmul %20, %21, %cst_14 {dimension_numbers = #tpu.dot_dimension_numbers<[1], [0], [0], [1], [0, 0, 1, 1], [], []>} : vector<16x128xbf16>, vector<128x128xbf16>, vector<16x128xf32> -> vector<16x128xf32>
    %c0_15 = arith.constant 0 : index
    %c0_16 = arith.constant 0 : index
    %23 = vector.load %arg7[%c0_15, %c0_16] : memref<1x128xf32, #tpu.memory_space<vmem>>, vector<1x128xf32>
    %24 = vector.broadcast %23 : vector<1x128xf32> to vector<16x128xf32>
    %25 = arith.addf %22, %24 : vector<16x128xf32>
    %c0_17 = arith.constant 0 : index
    %c0_18 = arith.constant 0 : index
    %26 = vector.load %arg8[%c0_17, %c0_18] : memref<16x128xf32, #tpu.memory_space<vmem>>, vector<16x128xf32>
    tpu.vector_store %arg8[%c0_17, %c0_18], %25 {strides = array<i32>} : memref<16x128xf32, #tpu.memory_space<vmem>>, vector<16x128xf32>,
    return
  }
  func.func @transform_0(%arg0: i32) -> (i32, i32) {
    %c0_i32 = arith.constant 0 : i32
    %c0_i32_0 = arith.constant 0 : i32
    return %arg0, %c0_i32 : i32, i32
  }
  func.func @transform_1(%arg0: i32) -> (i32, i32) {
    %c0_i32 = arith.constant 0 : i32
    %c0_i32_0 = arith.constant 0 : i32
    %c0_i32_1 = arith.constant 0 : i32
    return %c0_i32, %c0_i32_0 : i32, i32
  }
  func.func @transform_2(%arg0: i32) -> (i32, i32) {
    %c0_i32 = arith.constant 0 : i32
    %c0_i32_0 = arith.constant 0 : i32
    %c0_i32_1 = arith.constant 0 : i32
    return %c0_i32, %c0_i32_0 : i32, i32
  }
  func.func @transform_3(%arg0: i32) -> (i32, i32) {
    %c0_i32 = arith.constant 0 : i32
    %c0_i32_0 = arith.constant 0 : i32
    %c0_i32_1 = arith.constant 0 : i32
    return %c0_i32, %c0_i32_0 : i32, i32
  }
  func.func @transform_4(%arg0: i32) -> (i32, i32) {
    %c0_i32 = arith.constant 0 : i32
    %c0_i32_0 = arith.constant 0 : i32
    %c0_i32_1 = arith.constant 0 : i32
    return %c0_i32, %c0_i32_0 : i32, i32
  }
  func.func @transform_5(%arg0: i32) -> (i32, i32) {
    %c0_i32 = arith.constant 0 : i32
    %c0_i32_0 = arith.constant 0 : i32
    %c0_i32_1 = arith.constant 0 : i32
    return %c0_i32, %c0_i32_0 : i32, i32
  }
  func.func @transform_6(%arg0: i32) -> (i32, i32) {
    %c0_i32 = arith.constant 0 : i32
    %c0_i32_0 = arith.constant 0 : i32
    %c0_i32_1 = arith.constant 0 : i32
    return %c0_i32, %c0_i32_0 : i32, i32
  }
  func.func @transform_7(%arg0: i32) -> (i32, i32) {
    %c0_i32 = arith.constant 0 : i32
    %c0_i32_0 = arith.constant 0 : i32
    return %arg0, %c0_i32 : i32, i32
  }
}

</mosaic_0001>

<bundles_post_ra>
// kernel: tpu_custom_call.1
= control target key start
LH: loop header
LB: loop body
LE: loop exit
PB: predicated region body
PF: predicated region fallthrough
CT: control target
= control target key end

     0   :  { %12 = vsyncpa [#allocation3], 0  ;;  %s472_s0 = inlined_call_operand.hbm [shape: f32[16,128], index: 0, kind: input, shape index: {}]   ;;  %s473_s1 = inlined_call_operand.hbm [shape: f32[128,128], index: 1, kind: input, shape index: {}]   ;;  %s474_s2 = inlined_call_operand.vmem [shape: f32[1,128], index: 2, kind: input, shape index: {}]   ;;  %s475_s3 = inlined_call_operand.hbm [shape: f32[128,128], index: 3, kind: input, shape index: {}]   ;;  %s476_s4 = inlined_call_operand.vmem [shape: f32[1,128], index: 4, kind: input, shape index: {}]   ;;  %s477_s5 = inlined_call_operand.hbm [shape: f32[128,128], index: 5, kind: input, shape index: {}]   ;;  %s478_s6 = inlined_call_operand.vmem [shape: f32[1,128], index: 6, kind: input, shape index: {}]   ;;  %s479_s7 = inlined_call_operand.hbm [shape: f32[16,128], index: 7, kind: output, shape index: {}]  }
   0x1   :  { %13 = vsyncpa [#allocation6], 0 }
   0x2   :  { %14 = vsyncpa [#allocation9], 0 }
   0x3   :  { %15 = vsyncpa [#allocation4], 0  ;;  %s33_s26 = sshll.u32 %s473_s1, 4  ;;  %s386_s27 = smov [#allocation5]   ;;  %s34_s26 = int_to_ptr.hbm [resolvable:$true] %s33_s26 }
   0x4   :  { %s35_s28 = sshll.u32 %s386_s27, 4  ;;  %s20_s8 = sshll.u32 %s472_s0, 4  ;;  %s36_s28 = int_to_ptr.vmem [resolvable:$true] %s35_s28  ;;  %s21_s8 = int_to_ptr.hbm [resolvable:$true] %s20_s8 }
   0x5   :  { %s387_s9 = smov 128   ;;  %s388_s10 = smov 8  }
   0x6   :  { %41 = dma.hbm_to_vmem [thread:$0]  %s34_s26, 2048, %s36_s28, [#allocation6], %s387_s9, %s387_s9, %s388_s10  }
   0x7   :  { %s389_s11 = smov [#allocation2]   ;;  %s48_s1 = sshll.u32 %s475_s3, 4  ;;  %s49_s1 = int_to_ptr.hbm [resolvable:$true] %s48_s1 }
   0x8   :  { %s22_s12 = sshll.u32 %s389_s11, 4  ;;  %s63_s16 = sshll.u32 %s477_s5, 4  ;;  %s23_s12 = int_to_ptr.vmem [resolvable:$true] %s22_s12  ;;  %s64_s16 = int_to_ptr.hbm [resolvable:$true] %s63_s16 }
   0x9   :  { %28 = dma.hbm_to_vmem [thread:$0]  %s21_s8, 256, %s23_s12, [#allocation3], %s387_s9, %s387_s9, %s388_s10  }
   0xa   :  { %s390_s17 = smov [#allocation7]   ;;  %s391_s19 = smov [#allocation8]  }
   0xb   :  { %s50_s18 = sshll.u32 %s390_s17, 4  ;;  %s65_s3 = sshll.u32 %s391_s19, 4  ;;  %s51_s18 = int_to_ptr.vmem [resolvable:$true] %s50_s18  ;;  %s66_s3 = int_to_ptr.vmem [resolvable:$true] %s65_s3 }
   0xc   :  { %56 = dma.hbm_to_vmem [thread:$0]  %s49_s1, 2048, %s51_s18, [#allocation6], %s387_s9, %s387_s9, %s388_s10  }
   0xd   :  { %71 = dma.hbm_to_vmem [thread:$0]  %s64_s16, 2048, %s66_s3, [#allocation9], %s387_s9, %s387_s9, %s388_s10  }
   0xe   :  { %378 = dma.done.wait [#allocation3], 256  }
   0xf   :  { %379 = vsyncadd [#allocation3], 4294967040 }
  0x10   :  { %380 = dma.done.wait [#allocation6], 4096  }
  0x11   :  { %381 = vsyncadd [#allocation6], 4294963200 }
  0x12   :  { %382 = dma.done.wait [#allocation9], 2048  }
  0x13   :  { %383 = vsyncadd [#allocation9], 4294965248  ;;  %v106_v0 = vld [vmem:[#allocation5 + $0x70] sm:$0xff]  ;;  %v107_v1 = vld [vmem:[#allocation5 + $0x78] sm:$0xff]  ;;  %s392_s24 = smov [#allocation10]  }
  0x14   :  { %v104_v2 = vld [vmem:[#allocation5 + $0x60] sm:$0xff]  ;;  %v116_v3 = vpack.c.bf16 %v107_v1, %v106_v0  ;;  %v105_v4 = vld [vmem:[#allocation5 + $0x68] sm:$0xff]  ;;  %v102_v6 = vld [vmem:[#allocation5 + $0x50] sm:$0xff]  ;;  %s231_s25 = sshll.u32 %s392_s24, 4  ;;  %s232_s25 = int_to_ptr.vmem [resolvable:$true] %s231_s25 }
  0x15   :  { %v115_v5 = vpack.c.bf16 %v105_v4, %v104_v2  ;;  %v103_v7 = vld [vmem:[#allocation5 + $0x58] sm:$0xff]  ;;  %v151_v8 = vld [vmem:[#allocation7 + $0x70] sm:$0xff]  ;;  %v149_v10 = vld [vmem:[#allocation7 + $0x60] sm:$0xff] }
  0x16   :  { %121 = vmatpush.bf16.msra.mxu0 %v116_v3  ;;  %v152_v9 = vld [vmem:[#allocation7 + $0x78] sm:$0xff]  ;;  %v114_v11 = vpack.c.bf16 %v103_v7, %v102_v6  ;;  %v150_v13 = vld [vmem:[#allocation7 + $0x68] sm:$0xff]  ;;  %v100_v14 = vld [vmem:[#allocation5 + $0x40] sm:$0xff] }
  0x17   :  { %v161_v12 = vpack.c.bf16 %v152_v9, %v151_v8  ;;  %v101_v15 = vld [vmem:[#allocation5 + $0x48] sm:$0xff]  ;;  %v160_v16 = vpack.c.bf16 %v150_v13, %v149_v10  ;;  %v147_v17 = vld [vmem:[#allocation7 + $0x50] sm:$0xff]  ;;  %v148_v18 = vld [vmem:[#allocation7 + $0x58] sm:$0xff] }
  0x18   :  { %v113_v19 = vpack.c.bf16 %v101_v15, %v100_v14  ;;  %v98_v20 = vld [vmem:[#allocation5 + $0x30] sm:$0xff]  ;;  %v99_v21 = vld [vmem:[#allocation5 + $0x38] sm:$0xff]  ;;  %v159_v22 = vpack.c.bf16 %v148_v18, %v147_v17  ;;  %v145_v23 = vld [vmem:[#allocation7 + $0x40] sm:$0xff] }
  0x19   :  { %166 = vmatpush.bf16.msra.mxu1 %v161_v12  ;;  %v146_v24 = vld [vmem:[#allocation7 + $0x48] sm:$0xff]  ;;  %v112_v25 = vpack.c.bf16 %v99_v21, %v98_v20  ;;  %v96_v26 = vld [vmem:[#allocation5 + $0x20] sm:$0xff]  ;;  %v94_v30 = vld [vmem:[#allocation5 + $0x10] sm:$0xff] }
  0x1a   :  { %122 = vmatpush.bf16.msra.mxu0 %v115_v5  ;;  %v97_v27 = vld [vmem:[#allocation5 + $0x28] sm:$0xff]  ;;  %v158_v28 = vpack.c.bf16 %v146_v24, %v145_v23  ;;  %v95_v31 = vld [vmem:[#allocation5 + $0x18] sm:$0xff]  ;;  %v92_v33 = vld [vmem:[#allocation5] sm:$0xff] }
  0x1b   :  { %v111_v29 = vpack.c.bf16 %v97_v27, %v96_v26  ;;  %v110_v32 = vpack.c.bf16 %v95_v31, %v94_v30  ;;  %v93_v34 = vld [vmem:[#allocation5 + $0x8] sm:$0xff]  ;;  %v90_v36 = vld [vmem:[#allocation2] sm:$0xff]  ;;  %v91_v37 = vld [vmem:[#allocation2 + $0x8] sm:$0xff] }
  0x1c   :  { %v109_v35 = vpack.c.bf16 %v93_v34, %v92_v33  ;;  %v108_v38 = vpack.c.bf16 %v91_v37, %v90_v36  ;;  %v143_v39 = vld [vmem:[#allocation7 + $0x30] sm:$0xff]  ;;  %v144_v40 = vld [vmem:[#allocation7 + $0x38] sm:$0xff]  ;;  %v141_v42 = vld [vmem:[#allocation7 + $0x20] sm:$0xff] }
  0x1d   :  { %167 = vmatpush.bf16.msra.mxu1 %v160_v16  ;;  %v157_v41 = vpack.c.bf16 %v144_v40, %v143_v39  ;;  %v142_v43 = vld [vmem:[#allocation7 + $0x28] sm:$0xff]  ;;  %v139_v45 = vld [vmem:[#allocation7 + $0x10] sm:$0xff]  ;;  %v140_v46 = vld [vmem:[#allocation7 + $0x18] sm:$0xff] }
  0x1e   :  { %123 = vmatpush.bf16.msra.mxu0 %v114_v11  ;;  %v156_v44 = vpack.c.bf16 %v142_v43, %v141_v42  ;;  %v155_v47 = vpack.c.bf16 %v140_v46, %v139_v45  ;;  %v137_v48 = vld [vmem:[#allocation7] sm:$0xff]  ;;  %v138_v49 = vld [vmem:[#allocation7 + $0x8] sm:$0xff]  ;;  %v196_v51 = vld [vmem:[#allocation8 + $0x70] sm:$0xff] }
  0x1f   :  { %v154_v50 = vpack.c.bf16 %v138_v49, %v137_v48  ;;  %v197_v52 = vld [vmem:[#allocation8 + $0x78] sm:$0xff]  ;;  %v194_v53 = vld [vmem:[#allocation8 + $0x60] sm:$0xff]  ;;  %v195_v55 = vld [vmem:[#allocation8 + $0x68] sm:$0xff] }
  0x20   :  { %v206_v54 = vpack.c.bf16 %v197_v52, %v196_v51  ;;  %v205_v56 = vpack.c.bf16 %v195_v55, %v194_v53  ;;  %v192_v57 = vld [vmem:[#allocation8 + $0x50] sm:$0xff]  ;;  %v193_v58 = vld [vmem:[#allocation8 + $0x58] sm:$0xff]  ;;  %v190_v60 = vld [vmem:[#allocation8 + $0x40] sm:$0xff] }
  0x21   :  { %168 = vmatpush.bf16.msra.mxu1 %v159_v22  ;;  %v204_v59 = vpack.c.bf16 %v193_v58, %v192_v57  ;;  %v191_v61 = vld [vmem:[#allocation8 + $0x48] sm:$0xff]  ;;  %v255_v0 = vld [vmem:[%s474_s2] ss:$0 sm:$0xff]  ;;  %v189_v8 = vld [vmem:[#allocation8 + $0x38] sm:$0xff] }
  0x22   :  { %124 = vmatpush.bf16.msra.mxu0 %v113_v19  ;;  %211 = vmatpush.bf16.msra.mxu2 %v206_v54  ;;  %v203_v62 = vpack.c.bf16 %v191_v61, %v190_v60  ;;  %v188_v7 = vld [vmem:[#allocation8 + $0x30] sm:$0xff]  ;;  %v186_v10 = vld [vmem:[#allocation8 + $0x20] sm:$0xff]  ;;  %v187_v11 = vld [vmem:[#allocation8 + $0x28] sm:$0xff] }
  0x23   :  { %v202_v9 = vpack.c.bf16 %v189_v8, %v188_v7  ;;  %v201_v12 = vpack.c.bf16 %v187_v11, %v186_v10  ;;  %v184_v13 = vld [vmem:[#allocation8 + $0x10] sm:$0xff]  ;;  %v185_v14 = vld [vmem:[#allocation8 + $0x18] sm:$0xff]  ;;  %v182_v16 = vld [vmem:[#allocation8] sm:$0xff] }
  0x24   :  { %v200_v15 = vpack.c.bf16 %v185_v14, %v184_v13  ;;  %v183_v17 = vld [vmem:[#allocation8 + $0x8] sm:$0xff]  ;;  %v256_v20 = vld [vmem:[%s476_s4] ss:$0 sm:$0xff]  ;;  %s233_s4 = sshll.u32 %s479_s7, 4  ;;  %s234_s4 = int_to_ptr.hbm [resolvable:$true] %s233_s4 }
  0x25   :  { %169 = vmatpush.bf16.msra.mxu1 %v158_v28  ;;  %v199_v18 = vpack.c.bf16 %v183_v17, %v182_v16  ;;  %v257_v27 = vld [vmem:[%s478_s6] ss:$0 sm:$0xff] }
  0x26   :  { %125 = vmatpush.bf16.msra.mxu0 %v112_v25  ;;  %212 = vmatpush.bf16.msra.mxu2 %v205_v56 }
  0x29   :  { %170 = vmatpush.bf16.msra.mxu1 %v157_v41 }
  0x2a   :  { %126 = vmatpush.bf16.msra.mxu0 %v111_v29  ;;  %213 = vmatpush.bf16.msra.mxu2 %v204_v59 }
  0x2d   :  { %171 = vmatpush.bf16.msra.mxu1 %v156_v44 }
  0x2e   :  { %127 = vmatpush.bf16.msra.mxu0 %v110_v32  ;;  %214 = vmatpush.bf16.msra.mxu2 %v203_v62 }
  0x31   :  { %172 = vmatpush.bf16.msra.mxu1 %v155_v47 }
  0x32   :  { %128 = vmatpush.bf16.msra.mxu0 %v109_v35  ;;  %215 = vmatpush.bf16.msra.mxu2 %v202_v9 }
  0x35   :  { %129 = vmatmul.bf16.vlgmr.msra.gmra.mxu0 %v108_v38  ;;  %173 = vmatpush.bf16.msra.mxu1 %v154_v50 }
  0x36   :  { %216 = vmatpush.bf16.msra.mxu2 %v201_v12 }
  0x3a   :  { %217 = vmatpush.bf16.msra.mxu2 %v200_v15 }
  0x3e   :  { %218 = vmatpush.bf16.msra.mxu2 %v199_v18 }
  0xb2   :  { %v130_v63 = vpop.f32.mrf.mxu0 }
  0xb3   :  { %v131_v1 = vadd.f32 %v255_v0, %v130_v63 }
  0xb5   :  { %v135_v4 = vmax.f32 %v131_v1, 0.0 }
  0xba   :  { %v132_v2 = vpop.f32.mrf.mxu0 }
  0xbb   :  { %v133_v3 = vadd.f32 %v255_v0, %v132_v2 }
  0xbd   :  { %v136_v5 = vmax.f32 %v133_v3, 0.0 }
  0xbf   :  { %v153_v6 = vpack.c.bf16 %v136_v5, %v135_v4 }
  0xc1   :  { %174 = vmatmul.bf16.vlgmr.msra.gmra.mxu1 %v153_v6 }
 0x13e   :  { %v175_v19 = vpop.f32.mrf.mxu1 }
 0x13f   :  { %v176_v21 = vadd.f32 %v256_v20, %v175_v19 }
 0x141   :  { %v180_v24 = vmax.f32 %v176_v21, 0.0 }
 0x146   :  { %v177_v22 = vpop.f32.mrf.mxu1 }
 0x147   :  { %v178_v23 = vadd.f32 %v256_v20, %v177_v22 }
 0x149   :  { %v181_v25 = vmax.f32 %v178_v23, 0.0 }
 0x14b   :  { %v198_v26 = vpack.c.bf16 %v181_v25, %v180_v24 }
 0x14d   :  { %219 = vmatmul.bf16.vlgmr.msra.gmra.mxu2 %v198_v26 }
 0x1d0   :  { %v220_v28 = vpop.f32.mrf.mxu2 }
 0x1d1   :  { %v221_v29 = vadd.f32 %v257_v27, %v220_v28 }
 0x1d3   :  { %225 = vst [vmem:[#allocation10] sm:$0xff] %v221_v29 }
 0x1d8   :  { %v222_v30 = vpop.f32.mrf.mxu2 }
 0x1d9   :  { %v223_v31 = vadd.f32 %v257_v27, %v222_v30 }
 0x1db   :  { %226 = vst [vmem:[#allocation10 + $0x8] sm:$0xff] %v223_v31 }
 0x1dc   :  { %239 = dma.vmem_to_hbm [thread:$0]  %s232_s25, 256, %s234_s4, [#allocation4], %s387_s9, %s387_s9, %s388_s10  }
 0x1dd   :  { %384 = dma.done.wait [#allocation4], 256  }
 0x1de   :  { %385 = vsyncadd [#allocation4], 4294967040 }
 0x1df   :  { %244 = vsyncpa [#allocation3], 1 }
 0x1e0   :  { %245 = vsyncpa [#allocation6], 1 }
 0x1e1   :  { %246 = vsyncpa [#allocation9], 1 }
 0x1e2   :  { %247 = vsyncpa [#allocation4], 1 }

// kernel: tpu_custom_call.1
= control target key start
LH: loop header
LB: loop body
LE: loop exit
PB: predicated region body
PF: predicated region fallthrough
CT: control target
= control target key end

     0   :  { %12 = vsyncpa [#allocation3], 0  ;;  %s472_s0 = inlined_call_operand.hbm [shape: f32[16,128], index: 0, kind: input, shape index: {}]   ;;  %s473_s1 = inlined_call_operand.hbm [shape: f32[128,128], index: 1, kind: input, shape index: {}]   ;;  %s474_s2 = inlined_call_operand.vmem [shape: f32[1,128], index: 2, kind: input, shape index: {}]   ;;  %s475_s3 = inlined_call_operand.hbm [shape: f32[128,128], index: 3, kind: input, shape index: {}]   ;;  %s476_s4 = inlined_call_operand.vmem [shape: f32[1,128], index: 4, kind: input, shape index: {}]   ;;  %s477_s5 = inlined_call_operand.hbm [shape: f32[128,128], index: 5, kind: input, shape index: {}]   ;;  %s478_s6 = inlined_call_operand.vmem [shape: f32[1,128], index: 6, kind: input, shape index: {}]   ;;  %s479_s7 = inlined_call_operand.hbm [shape: f32[16,128], index: 7, kind: output, shape index: {}]  }
   0x1   :  { %13 = vsyncpa [#allocation6], 0 }
   0x2   :  { %14 = vsyncpa [#allocation9], 0 }
   0x3   :  { %15 = vsyncpa [#allocation4], 0  ;;  %s33_s26 = sshll.u32 %s473_s1, 4  ;;  %s386_s27 = smov [#allocation5]   ;;  %s34_s26 = int_to_ptr.hbm [resolvable:$true] %s33_s26 }
   0x4   :  { %s35_s28 = sshll.u32 %s386_s27, 4  ;;  %s20_s8 = sshll.u32 %s472_s0, 4  ;;  %s36_s28 = int_to_ptr.vmem [resolvable:$true] %s35_s28  ;;  %s21_s8 = int_to_ptr.hbm [resolvable:$true] %s20_s8 }
   0x5   :  { %s387_s9 = smov 128   ;;  %s388_s10 = smov 8  }
   0x6   :  { %41 = dma.hbm_to_vmem [thread:$0]  %s34_s26, 2048, %s36_s28, [#allocation6], %s387_s9, %s387_s9, %s388_s10  }
   0x7   :  { %s389_s11 = smov [#allocation2]   ;;  %s48_s1 = sshll.u32 %s475_s3, 4  ;;  %s49_s1 = int_to_ptr.hbm [resolvable:$true] %s48_s1 }
   0x8   :  { %s22_s12 = sshll.u32 %s389_s11, 4  ;;  %s63_s16 = sshll.u32 %s477_s5, 4  ;;  %s23_s12 = int_to_ptr.vmem [resolvable:$true] %s22_s12  ;;  %s64_s16 = int_to_ptr.hbm [resolvable:$true] %s63_s16 }
   0x9   :  { %28 = dma.hbm_to_vmem [thread:$0]  %s21_s8, 256, %s23_s12, [#allocation3], %s387_s9, %s387_s9, %s388_s10  }
   0xa   :  { %s390_s17 = smov [#allocation7]   ;;  %s391_s19 = smov [#allocation8]  }
   0xb   :  { %s50_s18 = sshll.u32 %s390_s17, 4  ;;  %s65_s3 = sshll.u32 %s391_s19, 4  ;;  %s51_s18 = int_to_ptr.vmem [resolvable:$true] %s50_s18  ;;  %s66_s3 = int_to_ptr.vmem [resolvable:$true] %s65_s3 }
   0xc   :  { %56 = dma.hbm_to_vmem [thread:$0]  %s49_s1, 2048, %s51_s18, [#allocation6], %s387_s9, %s387_s9, %s388_s10  }
   0xd   :  { %71 = dma.hbm_to_vmem [thread:$0]  %s64_s16, 2048, %s66_s3, [#allocation9], %s387_s9, %s387_s9, %s388_s10  }
   0xe   :  { %378 = dma.done.wait [#allocation3], 256  }
   0xf   :  { %379 = vsyncadd [#allocation3], 4294967040 }
  0x10   :  { %380 = dma.done.wait [#allocation6], 4096  }
  0x11   :  { %381 = vsyncadd [#allocation6], 4294963200 }
  0x12   :  { %382 = dma.done.wait [#allocation9], 2048  }
  0x13   :  { %383 = vsyncadd [#allocation9], 4294965248  ;;  %v106_v0 = vld [vmem:[#allocation5 + $0x70] sm:$0xff]  ;;  %v107_v1 = vld [vmem:[#allocation5 + $0x78] sm:$0xff]  ;;  %s392_s24 = smov [#allocation10]  }
  0x14   :  { %v104_v2 = vld [vmem:[#allocation5 + $0x60] sm:$0xff]  ;;  %v116_v3 = vpack.c.bf16 %v107_v1, %v106_v0  ;;  %v105_v4 = vld [vmem:[#allocation5 + $0x68] sm:$0xff]  ;;  %v102_v6 = vld [vmem:[#allocation5 + $0x50] sm:$0xff]  ;;  %s231_s25 = sshll.u32 %s392_s24, 4  ;;  %s232_s25 = int_to_ptr.vmem [resolvable:$true] %s231_s25 }
  0x15   :  { %v115_v5 = vpack.c.bf16 %v105_v4, %v104_v2  ;;  %v103_v7 = vld [vmem:[#allocation5 + $0x58] sm:$0xff]  ;;  %v151_v8 = vld [vmem:[#allocation7 + $0x70] sm:$0xff]  ;;  %v149_v10 = vld [vmem:[#allocation7 + $0x60] sm:$0xff] }
  0x16   :  { %121 = vmatpush.bf16.msra.mxu0 %v116_v3  ;;  %v152_v9 = vld [vmem:[#allocation7 + $0x78] sm:$0xff]  ;;  %v114_v11 = vpack.c.bf16 %v103_v7, %v102_v6  ;;  %v150_v13 = vld [vmem:[#allocation7 + $0x68] sm:$0xff]  ;;  %v100_v14 = vld [vmem:[#allocation5 + $0x40] sm:$0xff] }
  0x17   :  { %v161_v12 = vpack.c.bf16 %v152_v9, %v151_v8  ;;  %v101_v15 = vld [vmem:[#allocation5 + $0x48] sm:$0xff]  ;;  %v160_v16 = vpack.c.bf16 %v150_v13, %v149_v10  ;;  %v147_v17 = vld [vmem:[#allocation7 + $0x50] sm:$0xff]  ;;  %v148_v18 = vld [vmem:[#allocation7 + $0x58] sm:$0xff] }
  0x18   :  { %v113_v19 = vpack.c.bf16 %v101_v15, %v100_v14  ;;  %v98_v20 = vld [vmem:[#allocation5 + $0x30] sm:$0xff]  ;;  %v99_v21 = vld [vmem:[#allocation5 + $0x38] sm:$0xff]  ;;  %v159_v22 = vpack.c.bf16 %v148_v18, %v147_v17  ;;  %v145_v23 = vld [vmem:[#allocation7 + $0x40] sm:$0xff] }
  0x19   :  { %166 = vmatpush.bf16.msra.mxu1 %v161_v12  ;;  %v146_v24 = vld [vmem:[#allocation7 + $0x48] sm:$0xff]  ;;  %v112_v25 = vpack.c.bf16 %v99_v21, %v98_v20  ;;  %v96_v26 = vld [vmem:[#allocation5 + $0x20] sm:$0xff]  ;;  %v94_v30 = vld [vmem:[#allocation5 + $0x10] sm:$0xff] }
  0x1a   :  { %122 = vmatpush.bf16.msra.mxu0 %v115_v5  ;;  %v97_v27 = vld [vmem:[#allocation5 + $0x28] sm:$0xff]  ;;  %v158_v28 = vpack.c.bf16 %v146_v24, %v145_v23  ;;  %v95_v31 = vld [vmem:[#allocation5 + $0x18] sm:$0xff]  ;;  %v92_v33 = vld [vmem:[#allocation5] sm:$0xff] }
  0x1b   :  { %v111_v29 = vpack.c.bf16 %v97_v27, %v96_v26  ;;  %v110_v32 = vpack.c.bf16 %v95_v31, %v94_v30  ;;  %v93_v34 = vld [vmem:[#allocation5 + $0x8] sm:$0xff]  ;;  %v90_v36 = vld [vmem:[#allocation2] sm:$0xff]  ;;  %v91_v37 = vld [vmem:[#allocation2 + $0x8] sm:$0xff] }
  0x1c   :  { %v109_v35 = vpack.c.bf16 %v93_v34, %v92_v33  ;;  %v108_v38 = vpack.c.bf16 %v91_v37, %v90_v36  ;;  %v143_v39 = vld [vmem:[#allocation7 + $0x30] sm:$0xff]  ;;  %v144_v40 = vld [vmem:[#allocation7 + $0x38] sm:$0xff]  ;;  %v141_v42 = vld [vmem:[#allocation7 + $0x20] sm:$0xff] }
  0x1d   :  { %167 = vmatpush.bf16.msra.mxu1 %v160_v16  ;;  %v157_v41 = vpack.c.bf16 %v144_v40, %v143_v39  ;;  %v142_v43 = vld [vmem:[#allocation7 + $0x28] sm:$0xff]  ;;  %v139_v45 = vld [vmem:[#allocation7 + $0x10] sm:$0xff]  ;;  %v140_v46 = vld [vmem:[#allocation7 + $0x18] sm:$0xff] }
  0x1e   :  { %123 = vmatpush.bf16.msra.mxu0 %v114_v11  ;;  %v156_v44 = vpack.c.bf16 %v142_v43, %v141_v42  ;;  %v155_v47 = vpack.c.bf16 %v140_v46, %v139_v45  ;;  %v137_v48 = vld [vmem:[#allocation7] sm:$0xff]  ;;  %v138_v49 = vld [vmem:[#allocation7 + $0x8] sm:$0xff]  ;;  %v196_v51 = vld [vmem:[#allocation8 + $0x70] sm:$0xff] }
  0x1f   :  { %v154_v50 = vpack.c.bf16 %v138_v49, %v137_v48  ;;  %v197_v52 = vld [vmem:[#allocation8 + $0x78] sm:$0xff]  ;;  %v194_v53 = vld [vmem:[#allocation8 + $0x60] sm:$0xff]  ;;  %v195_v55 = vld [vmem:[#allocation8 + $0x68] sm:$0xff] }
  0x20   :  { %v206_v54 = vpack.c.bf16 %v197_v52, %v196_v51  ;;  %v205_v56 = vpack.c.bf16 %v195_v55, %v194_v53  ;;  %v192_v57 = vld [vmem:[#allocation8 + $0x50] sm:$0xff]  ;;  %v193_v58 = vld [vmem:[#allocation8 + $0x58] sm:$0xff]  ;;  %v190_v60 = vld [vmem:[#allocation8 + $0x40] sm:$0xff] }
  0x21   :  { %168 = vmatpush.bf16.msra.mxu1 %v159_v22  ;;  %v204_v59 = vpack.c.bf16 %v193_v58, %v192_v57  ;;  %v191_v61 = vld [vmem:[#allocation8 + $0x48] sm:$0xff]  ;;  %v255_v0 = vld [vmem:[%s474_s2] ss:$0 sm:$0xff]  ;;  %v189_v8 = vld [vmem:[#allocation8 + $0x38] sm:$0xff] }
  0x22   :  { %124 = vmatpush.bf16.msra.mxu0 %v113_v19  ;;  %211 = vmatpush.bf16.msra.mxu2 %v206_v54  ;;  %v203_v62 = vpack.c.bf16 %v191_v61, %v190_v60  ;;  %v188_v7 = vld [vmem:[#allocation8 + $0x30] sm:$0xff]  ;;  %v186_v10 = vld [vmem:[#allocation8 + $0x20] sm:$0xff]  ;;  %v187_v11 = vld [vmem:[#allocation8 + $0x28] sm:$0xff] }
  0x23   :  { %v202_v9 = vpack.c.bf16 %v189_v8, %v188_v7  ;;  %v201_v12 = vpack.c.bf16 %v187_v11, %v186_v10  ;;  %v184_v13 = vld [vmem:[#allocation8 + $0x10] sm:$0xff]  ;;  %v185_v14 = vld [vmem:[#allocation8 + $0x18] sm:$0xff]  ;;  %v182_v16 = vld [vmem:[#allocation8] sm:$0xff] }
  0x24   :  { %v200_v15 = vpack.c.bf16 %v185_v14, %v184_v13  ;;  %v183_v17 = vld [vmem:[#allocation8 + $0x8] sm:$0xff]  ;;  %v256_v20 = vld [vmem:[%s476_s4] ss:$0 sm:$0xff]  ;;  %s233_s4 = sshll.u32 %s479_s7, 4  ;;  %s234_s4 = int_to_ptr.hbm [resolvable:$true] %s233_s4 }
  0x25   :  { %169 = vmatpush.bf16.msra.mxu1 %v158_v28  ;;  %v199_v18 = vpack.c.bf16 %v183_v17, %v182_v16  ;;  %v257_v27 = vld [vmem:[%s478_s6] ss:$0 sm:$0xff] }
  0x26   :  { %125 = vmatpush.bf16.msra.mxu0 %v112_v25  ;;  %212 = vmatpush.bf16.msra.mxu2 %v205_v56 }
  0x29   :  { %170 = vmatpush.bf16.msra.mxu1 %v157_v41 }
  0x2a   :  { %126 = vmatpush.bf16.msra.mxu0 %v111_v29  ;;  %213 = vmatpush.bf16.msra.mxu2 %v204_v59 }
  0x2d   :  { %171 = vmatpush.bf16.msra.mxu1 %v156_v44 }
  0x2e   :  { %127 = vmatpush.bf16.msra.mxu0 %v110_v32  ;;  %214 = vmatpush.bf16.msra.mxu2 %v203_v62 }
  0x31   :  { %172 = vmatpush.bf16.msra.mxu1 %v155_v47 }
  0x32   :  { %128 = vmatpush.bf16.msra.mxu0 %v109_v35  ;;  %215 = vmatpush.bf16.msra.mxu2 %v202_v9 }
  0x35   :  { %129 = vmatmul.bf16.vlgmr.msra.gmra.mxu0 %v108_v38  ;;  %173 = vmatpush.bf16.msra.mxu1 %v154_v50 }
  0x36   :  { %216 = vmatpush.bf16.msra.mxu2 %v201_v12 }
  0x3a   :  { %217 = vmatpush.bf16.msra.mxu2 %v200_v15 }
  0x3e   :  { %218 = vmatpush.bf16.msra.mxu2 %v199_v18 }
  0xb2   :  { %v130_v63 = vpop.f32.mrf.mxu0 }
  0xb3   :  { %v131_v1 = vadd.f32 %v255_v0, %v130_v63 }
  0xb5   :  { %v135_v4 = vmax.f32 %v131_v1, 0.0 }
  0xba   :  { %v132_v2 = vpop.f32.mrf.mxu0 }
  0xbb   :  { %v133_v3 = vadd.f32 %v255_v0, %v132_v2 }
  0xbd   :  { %v136_v5 = vmax.f32 %v133_v3, 0.0 }
  0xbf   :  { %v153_v6 = vpack.c.bf16 %v136_v5, %v135_v4 }
  0xc1   :  { %174 = vmatmul.bf16.vlgmr.msra.gmra.mxu1 %v153_v6 }
 0x13e   :  { %v175_v19 = vpop.f32.mrf.mxu1 }
 0x13f   :  { %v176_v21 = vadd.f32 %v256_v20, %v175_v19 }
 0x141   :  { %v180_v24 = vmax.f32 %v176_v21, 0.0 }
 0x146   :  { %v177_v22 = vpop.f32.mrf.mxu1 }
 0x147   :  { %v178_v23 = vadd.f32 %v256_v20, %v177_v22 }
 0x149   :  { %v181_v25 = vmax.f32 %v178_v23, 0.0 }
 0x14b   :  { %v198_v26 = vpack.c.bf16 %v181_v25, %v180_v24 }
 0x14d   :  { %219 = vmatmul.bf16.vlgmr.msra.gmra.mxu2 %v198_v26 }
 0x1d0   :  { %v220_v28 = vpop.f32.mrf.mxu2 }
 0x1d1   :  { %v221_v29 = vadd.f32 %v257_v27, %v220_v28 }
 0x1d3   :  { %225 = vst [vmem:[#allocation10] sm:$0xff] %v221_v29 }
 0x1d8   :  { %v222_v30 = vpop.f32.mrf.mxu2 }
 0x1d9   :  { %v223_v31 = vadd.f32 %v257_v27, %v222_v30 }
 0x1db   :  { %226 = vst [vmem:[#allocation10 + $0x8] sm:$0xff] %v223_v31 }
 0x1dc   :  { %239 = dma.vmem_to_hbm [thread:$0]  %s232_s25, 256, %s234_s4, [#allocation4], %s387_s9, %s387_s9, %s388_s10  }
 0x1dd   :  { %384 = dma.done.wait [#allocation4], 256  }
 0x1de   :  { %385 = vsyncadd [#allocation4], 4294967040 }
 0x1df   :  { %244 = vsyncpa [#allocation3], 1 }
 0x1e0   :  { %245 = vsyncpa [#allocation6], 1 }
 0x1e1   :  { %246 = vsyncpa [#allocation9], 1 }
 0x1e2   :  { %247 = vsyncpa [#allocation4], 1 }

</bundles_post_ra>
